<compile_context>
chip_gen: v7x
topology: tpu7x:2x2x1
jax: 0.10.0
libtpu: 0.0.40
codegen_flags: <defaults>
</compile_context>

<pallas_src>
import functools
import math

import jax
import jax.numpy as jnp
from jax.experimental import pallas as pl
from jax.experimental.pallas import tpu as pltpu

W_IN = 64        # default W for the demo (module takes W as a constructor arg)
HIDDEN = 32
OUT = 2
MAX_LOGICAL_ROWS_PER_TILE = 16384   # logical rows per grid step


def _round_up(n, m):
    return ((n + m - 1) // m) * m


def _pick_packing(n_rows):
    # Pack 4 logical rows per vreg row when possible (2 as fallback, 1 for odd counts).
    for p in (4, 2):
        if n_rows % p == 0:
            return p
    return 1


def _choose_packed_tile(bp, p, block_rows):
    if block_rows is not None:
        tbp = max(1, block_rows // p)
    elif bp <= 1024:
        tbp = bp                                   # single full-extent block
    else:
        cap = max(128, MAX_LOGICAL_ROWS_PER_TILE // p)
        # Guarantee >= 2 grid steps so "parallel" can shard rows across TensorCores.
        tbp = min(cap, _round_up(pl.cdiv(bp, 2), 128))
    if tbp >= bp:
        return bp
    # Tiled case: keep the row tile a multiple of 128 so the (transposed) output block's
    # lane dimension stays 128-aligned.
    return min(_round_up(max(tbp, 128), 128), bp)


def _mlp_kernel(x_ref, w1_ref, b1_ref, w2_ref, b2_ref, o_ref, *, transposed_out):
    # x_ref: (tile, W*P) in the input's native dtype -> cast to f32 on the VPU (x.float()).
    x = x_ref[...].astype(jnp.float32)
    h = jnp.dot(x, w1_ref[...], preferred_element_type=jnp.float32) + b1_ref[...]
    h = jnp.maximum(h, 0.0)                                   # ReLU
    # Dropout(p=0.5) in eval mode == identity.
    # TODO(synk): training-mode dropout (pltpu.prng_seed/prng_random_bits + 1/(1-p) scale).
    o = jnp.dot(h, w2_ref[...], preferred_element_type=jnp.float32) + b2_ref[...]
    if transposed_out:
        o_ref[...] = o.T   # (2P, tile): lane-dense store; XLU transpose on an idle slot
    else:
        o_ref[...] = o     # (tile, 2P): fallback layout


_TRANSPOSED_STORE_OK = None


def _transposed_store_supported():
    """One-time probe: can Mosaic lower a materialized 2-D f32 transpose?"""
    global _TRANSPOSED_STORE_OK
    if _TRANSPOSED_STORE_OK is None:
        def probe_kernel(x_ref, o_ref):
            o_ref[...] = x_ref[...].T
        try:
            x = jnp.arange(256 * 8, dtype=jnp.float32).reshape(256, 8)
            out = pl.pallas_call(
                probe_kernel,
                out_shape=jax.ShapeDtypeStruct((8, 256), jnp.float32),
            )(x)
            _TRANSPOSED_STORE_OK = bool(jnp.allclose(out, x.T))
        except Exception:  # noqa: BLE001  any lowering/compile failure -> safe fallback
            _TRANSPOSED_STORE_OK = False
    return _TRANSPOSED_STORE_OK


def torch_model_forward(x, w1, b1, w2, b2, *, block_rows=None):
    """Pallas forward pass equivalent to Torch_Model(W).forward(x) in eval mode."""
    w_in = w1.shape[0]
    n_rows = x.size // w_in                          # rows after view(-1, W)

    # --- row packing: P logical rows per vreg row -------------------------------------
    p = _pick_packing(n_rows)
    bp = n_rows // p
    xp = jnp.reshape(x, (bp, w_in * p))              # row-major bitcast reshape, no HBM copy

    eye = jnp.eye(p, dtype=jnp.float32)
    w1p = jnp.kron(eye, w1.astype(jnp.float32))                            # (W*P, 32*P)
    w2p = jnp.kron(eye, w2.astype(jnp.float32))                            # (32*P, 2*P)
    b1p = jnp.tile(jnp.reshape(b1, (1, -1)).astype(jnp.float32), (1, p))   # (1, 32*P)
    b2p = jnp.tile(jnp.reshape(b2, (1, -1)).astype(jnp.float32), (1, p))   # (1, 2*P)

    # --- tiling ------------------------------------------------------------------------
    tbp = _choose_packed_tile(bp, p, block_rows)
    grid = (pl.cdiv(bp, tbp),)   # ragged last block: reads padded, writes masked by Pallas

    # Lane-dense (transposed) output only matters when there is real work; tiny batches
    # (and the rare case where the transpose lowering probe fails) use the plain layout.
    transposed_out = bp >= 128 and _transposed_store_supported()

    hid = HIDDEN * p
    nout = OUT * p
    in_specs = [
        pl.BlockSpec((tbp, w_in * p), lambda i: (i, 0)),   # x rows, streamed / double-buffered
        pl.BlockSpec((w_in * p, hid), lambda i: (0, 0)),   # weights stay VMEM-resident
        pl.BlockSpec((1, hid), lambda i: (0, 0)),
        pl.BlockSpec((hid, nout), lambda i: (0, 0)),
        pl.BlockSpec((1, nout), lambda i: (0, 0)),
    ]
    if transposed_out:
        out_shape = jax.ShapeDtypeStruct((nout, bp), jnp.float32)
        out_specs = pl.BlockSpec((nout, tbp), lambda i: (0, i))
    else:
        out_shape = jax.ShapeDtypeStruct((bp, nout), jnp.float32)
        out_specs = pl.BlockSpec((tbp, nout), lambda i: (i, 0))

    in_bytes = jnp.dtype(x.dtype).itemsize
    cost = pl.CostEstimate(
        flops=2 * n_rows * (w_in * HIDDEN + HIDDEN * OUT),
        bytes_accessed=n_rows * w_in * in_bytes + n_rows * OUT * 4
        + (w_in * HIDDEN + HIDDEN + HIDDEN * OUT + OUT) * 4 * p,
        transcendentals=0,
    )

    out = pl.pallas_call(
        functools.partial(_mlp_kernel, transposed_out=transposed_out),
        out_shape=out_shape,
        grid=grid,
        in_specs=in_specs,
        out_specs=out_specs,
        compiler_params=pltpu.CompilerParams(
            dimension_semantics=("parallel",),
            vmem_limit_bytes=32 * 1024 * 1024,
        ),
        cost_estimate=cost,
    )(xp, w1p, b1p, w2p, b2p)

    if transposed_out:
        out = jnp.transpose(out)                  # (2P, B/P) -> (B/P, 2P); tiny XLA op
    return jnp.reshape(out, (n_rows, OUT))        # (B/P, 2P) -> (B, 2): free bitcast reshape


def init_params(key, w_in=W_IN):
    # PyTorch nn.Linear default init: U(-1/sqrt(fan_in), 1/sqrt(fan_in)).
    # Weights stored (in_features, out_features); the kernel computes x @ W + b.
    k1, k2, k3, k4 = jax.random.split(key, 4)
    bound1 = 1.0 / math.sqrt(w_in)
    bound2 = 1.0 / math.sqrt(HIDDEN)
    w1 = jax.random.uniform(k1, (w_in, HIDDEN), jnp.float32, -bound1, bound1)
    b1 = jax.random.uniform(k2, (HIDDEN,), jnp.float32, -bound1, bound1)
    w2 = jax.random.uniform(k3, (HIDDEN, OUT), jnp.float32, -bound2, bound2)
    b2 = jax.random.uniform(k4, (OUT,), jnp.float32, -bound2, bound2)
    return w1, b1, w2, b2


def _reference(x, w1, b1, w2, b2):
    x2d = jnp.reshape(x.astype(jnp.float32), (-1, w1.shape[0]))
    return jnp.maximum(x2d @ w1 + b1, 0.0) @ w2 + b2


if __name__ == "__main__":
    key = jax.random.PRNGKey(0)
    kx1, kx2, kx3, kp = jax.random.split(key, 4)
    w1, b1, w2, b2 = init_params(kp)

    # Test 1: small shape consistent with the module: (2, 4, 16) -> view(-1, 64) -> (2, 64).
    x = jax.random.normal(kx1, (2, 4, 16), dtype=jnp.float32)
    out = jax.block_until_ready(torch_model_forward(x, w1, b1, w2, b2))
    assert out.shape == (2, OUT)
    assert jnp.allclose(out, _reference(x, w1, b1, w2, b2), atol=1e-5, rtol=1e-5)

    # Test 2: bf16 input, 4-row packing, multi-step grid with a ragged last block
    #   (1000 rows -> 250 packed rows; block_rows=512 -> packed tile 128 -> grid=(2,)).
    x_big = jax.random.normal(kx2, (1000, W_IN), dtype=jnp.bfloat16)
    out_big = jax.block_until_ready(
        torch_model_forward(x_big, w1, b1, w2, b2, block_rows=512))
    assert out_big.shape == (1000, OUT)
    assert jnp.allclose(out_big, _reference(x_big, w1, b1, w2, b2), atol=2e-2, rtol=2e-2)

    # Test 3: odd row count exercises the unpacked (P=1) fallback path.
    x_odd = jax.random.normal(kx3, (37, W_IN), dtype=jnp.float32)
    out_odd = jax.block_until_ready(torch_model_forward(x_odd, w1, b1, w2, b2))
    assert out_odd.shape == (37, OUT)
    assert jnp.allclose(out_odd, _reference(x_odd, w1, b1, w2, b2), atol=1e-5, rtol=1e-5)

    print("KERNEL_OK")
</pallas_src>

<mosaic_0001>
module attributes {stable_mosaic.version = 11 : i64} {
  func.func @_mlp_kernel(%arg0: i32, %arg1: memref<1x128xf32, #tpu.memory_space<vmem>>, %arg2: memref<128x64xf32, #tpu.memory_space<vmem>>, %arg3: memref<1x64xf32, #tpu.memory_space<vmem>>, %arg4: memref<64x4xf32, #tpu.memory_space<vmem>>, %arg5: memref<1x4xf32, #tpu.memory_space<vmem>>, %arg6: memref<1x4xf32, #tpu.memory_space<vmem>>) attributes {dimension_semantics = [#tpu.dimension_semantics<parallel>], iteration_bounds = array<i64: 1>, scalar_prefetch = 0 : i64, scratch_operands = 0 : i64, tpu.core_type = #tpu.core_type<tc>, window_params = [{transform_indices = @transform_0, window_bounds = array<i64: 1, 128>}, {pipeline_mode = #tpu.pipeline_mode<synchronous>, transform_indices = @transform_1, window_bounds = array<i64: 128, 64>}, {pipeline_mode = #tpu.pipeline_mode<synchronous>, transform_indices = @transform_2, window_bounds = array<i64: 1, 64>}, {pipeline_mode = #tpu.pipeline_mode<synchronous>, transform_indices = @transform_3, window_bounds = array<i64: 64, 4>}, {pipeline_mode = #tpu.pipeline_mode<synchronous>, transform_indices = @transform_4, window_bounds = array<i64: 1, 4>}, {transform_indices = @transform_5, window_bounds = array<i64: 1, 4>}]} {
    %c0 = arith.constant 0 : index
    %c0_0 = arith.constant 0 : index
    %0 = vector.load %arg1[%c0, %c0_0] : memref<1x128xf32, #tpu.memory_space<vmem>>, vector<1x128xf32>
    %c0_1 = arith.constant 0 : index
    %c0_2 = arith.constant 0 : index
    %1 = vector.load %arg2[%c0_1, %c0_2] : memref<128x64xf32, #tpu.memory_space<vmem>>, vector<128x64xf32>
    %cst = arith.constant dense<0.000000e+00> : vector<1x64xf32>
    %2 = tpu.matmul %0, %1, %cst {dimension_numbers = #tpu.dot_dimension_numbers<[1], [0], [0], [1], [0, 0, 1, 1], [], []>} : vector<1x128xf32>, vector<128x64xf32>, vector<1x64xf32> -> vector<1x64xf32>
    %c0_3 = arith.constant 0 : index
    %c0_4 = arith.constant 0 : index
    %3 = vector.load %arg3[%c0_3, %c0_4] : memref<1x64xf32, #tpu.memory_space<vmem>>, vector<1x64xf32>
    %4 = arith.addf %2, %3 : vector<1x64xf32>
    %cst_5 = arith.constant 0.000000e+00 : f32
    %5 = vector.broadcast %cst_5 : f32 to vector<1x64xf32>
    %6 = arith.maximumf %4, %5 : vector<1x64xf32>
    %c0_6 = arith.constant 0 : index
    %c0_7 = arith.constant 0 : index
    %7 = vector.load %arg4[%c0_6, %c0_7] : memref<64x4xf32, #tpu.memory_space<vmem>>, vector<64x4xf32>
    %cst_8 = arith.constant dense<0.000000e+00> : vector<1x4xf32>
    %8 = tpu.matmul %6, %7, %cst_8 {dimension_numbers = #tpu.dot_dimension_numbers<[1], [0], [0], [1], [0, 0, 1, 1], [], []>} : vector<1x64xf32>, vector<64x4xf32>, vector<1x4xf32> -> vector<1x4xf32>
    %c0_9 = arith.constant 0 : index
    %c0_10 = arith.constant 0 : index
    %9 = vector.load %arg5[%c0_9, %c0_10] : memref<1x4xf32, #tpu.memory_space<vmem>>, vector<1x4xf32>
    %10 = arith.addf %8, %9 : vector<1x4xf32>
    %c0_11 = arith.constant 0 : index
    %c0_12 = arith.constant 0 : index
    %11 = vector.load %arg6[%c0_11, %c0_12] : memref<1x4xf32, #tpu.memory_space<vmem>>, vector<1x4xf32>
    tpu.vector_store %arg6[%c0_11, %c0_12], %10 {strides = array<i32>} : memref<1x4xf32, #tpu.memory_space<vmem>>, vector<1x4xf32>,
    return
  }
  func.func @transform_0(%arg0: i32) -> (i32, i32) {
    %c0_i32 = arith.constant 0 : i32
    %c0_i32_0 = arith.constant 0 : i32
    return %arg0, %c0_i32 : i32, i32
  }
  func.func @transform_1(%arg0: i32) -> (i32, i32) {
    %c0_i32 = arith.constant 0 : i32
    %c0_i32_0 = arith.constant 0 : i32
    %c0_i32_1 = arith.constant 0 : i32
    return %c0_i32, %c0_i32_0 : i32, i32
  }
  func.func @transform_2(%arg0: i32) -> (i32, i32) {
    %c0_i32 = arith.constant 0 : i32
    %c0_i32_0 = arith.constant 0 : i32
    %c0_i32_1 = arith.constant 0 : i32
    return %c0_i32, %c0_i32_0 : i32, i32
  }
  func.func @transform_3(%arg0: i32) -> (i32, i32) {
    %c0_i32 = arith.constant 0 : i32
    %c0_i32_0 = arith.constant 0 : i32
    %c0_i32_1 = arith.constant 0 : i32
    return %c0_i32, %c0_i32_0 : i32, i32
  }
  func.func @transform_4(%arg0: i32) -> (i32, i32) {
    %c0_i32 = arith.constant 0 : i32
    %c0_i32_0 = arith.constant 0 : i32
    %c0_i32_1 = arith.constant 0 : i32
    return %c0_i32, %c0_i32_0 : i32, i32
  }
  func.func @transform_5(%arg0: i32) -> (i32, i32) {
    %c0_i32 = arith.constant 0 : i32
    %c0_i32_0 = arith.constant 0 : i32
    return %arg0, %c0_i32 : i32, i32
  }
}

</mosaic_0001>

<bundles_post_ra>
// kernel: tpu_custom_call.1
= control target key start
LH: loop header
LB: loop body
LE: loop exit
PB: predicated region body
PF: predicated region fallthrough
CT: control target
= control target key end

     0   :  { %v354_v3 = vmov 0.0|0.0   ;;  %vm355_vm0 = vmmov 0   ;;  %v356_v6 = vmov 0.0   ;;  %s481_s0 = inlined_call_operand.vmem [shape: f32[1,128], index: 0, kind: input, shape index: {}]   ;;  %s482_s1 = inlined_call_operand.vmem [shape: f32[128,64], index: 1, kind: input, shape index: {}]   ;;  %s483_s2 = inlined_call_operand.vmem [shape: f32[1,64], index: 2, kind: input, shape index: {}]   ;;  %s484_s3 = inlined_call_operand.vmem [shape: f32[64,4], index: 3, kind: input, shape index: {}]   ;;  %s485_s4 = inlined_call_operand.vmem [shape: f32[1,4], index: 4, kind: input, shape index: {}]   ;;  %s486_s5 = inlined_call_operand.hbm [shape: f32[1,4], index: 5, kind: output, shape index: {}]  }
   0x1   :  { %v22_v0 = vld [vmem:[%s482_s1] sm:$0xff]  ;;  %v23_v1 = vld [vmem:[%s482_s1 + $0x8] sm:$0xff]  ;;  %v24_v2 = vld [vmem:[%s482_s1 + $0x10] sm:$0xff]  ;;  %290 = vmatprep.subr.bf16.mxu0 %v354_v3  ;;  %268 = vmatprep.mubr.msk.f32.mxu0 %vm355_vm0, %v356_v6 }
   0x2   :  { %v291_v4 = vpack.c.bf16 %v23_v1, %v22_v0  ;;  %v25_v5 = vld [vmem:[%s482_s1 + $0x18] sm:$0xff]  ;;  %314 = vmatprep.subr.bf16.mxu1 %v354_v3  ;;  %287 = vmatprep.mubr.msk.f32.mxu1 %vm355_vm0, %v356_v6  ;;  %v26_v8 = vld [vmem:[%s482_s1 + $0x20] sm:$0xff]  ;;  %v27_v9 = vld [vmem:[%s482_s1 + $0x28] sm:$0xff] }
   0x3   :  { %v294_v7 = vpack.c.bf16 %v25_v5, %v24_v2  ;;  %v110_v10 = vld [vmem:[%s484_s3] sm:$0xff]  ;;  %v111_v11 = vld [vmem:[%s484_s3 + $0x8] sm:$0xff]  ;;  %v112_v12 = vld [vmem:[%s484_s3 + $0x10] sm:$0xff]  ;;  %v297_v14 = vpack.c.bf16 %v27_v9, %v26_v8 }
   0x4   :  { %292 = vmatpush3.bf16.msra.mxu0 %v291_v4  ;;  %v113_v13 = vld [vmem:[%s484_s3 + $0x18] sm:$0xff]  ;;  %v315_v15 = vpack.c.bf16 %v111_v11, %v110_v10  ;;  %v28_v16 = vld [vmem:[%s482_s1 + $0x30] sm:$0xff] }
   0x5   :  { %293 = vmatprep.subr.bf16.mxu0 %v354_v3  ;;  %v29_v17 = vld [vmem:[%s482_s1 + $0x38] sm:$0xff] }
   0x8   :  { %295 = vmatpush3.bf16.msra.mxu0 %v294_v7 }
   0x9   :  { %296 = vmatprep.subr.bf16.mxu0 %v354_v3 }
   0xa   :  { %10 = vsyncpa [#allocation3], 0  ;;  %316 = vmatpush3.bf16.msra.mxu1 %v315_v15  ;;  %v318_v18 = vpack.c.bf16 %v113_v13, %v112_v12  ;;  %v114_v19 = vld [vmem:[%s484_s3 + $0x20] sm:$0xff]  ;;  %v115_v20 = vld [vmem:[%s484_s3 + $0x28] sm:$0xff]  ;;  %v300_v21 = vpack.c.bf16 %v29_v17, %v28_v16  ;;  %vm119_vm1 = vcmask 523264   ;;  %s357_s20 = smov [#allocation2]  }
   0xb   :  { %317 = vmatprep.subr.bf16.mxu1 %v354_v3  ;;  %v30_v22 = vld [vmem:[%s482_s1 + $0x40] sm:$0xff]  ;;  %v31_v23 = vld [vmem:[%s482_s1 + $0x48] sm:$0xff]  ;;  %v321_v24 = vpack.c.bf16 %v115_v20, %v114_v19  ;;  %v32_v26 = vld [vmem:[%s482_s1 + $0x50] sm:$0xff]  ;;  %s201_s21 = sshll.u32 %s357_s20, 4  ;;  %vm193_vm2 = vcmask 24576   ;;  %s202_s21 = int_to_ptr.vmem [resolvable:$true] %s201_s21 }
   0xc   :  { %298 = vmatpush3.bf16.msra.mxu0 %v297_v14  ;;  %v303_v25 = vpack.c.bf16 %v31_v23, %v30_v22  ;;  %v33_v27 = vld [vmem:[%s482_s1 + $0x58] sm:$0xff]  ;;  %v34_v29 = vld [vmem:[%s482_s1 + $0x60] sm:$0xff]  ;;  %v35_v30 = vld [vmem:[%s482_s1 + $0x68] sm:$0xff]  ;;  %p335_p1 = scmp.lt.s32.totalorder %s202_s21, %s202_s21 }
   0xd   :  { %299 = vmatprep.subr.bf16.mxu0 %v354_v3  ;;  %v306_v28 = vpack.c.bf16 %v33_v27, %v32_v26  ;;  %v309_v31 = vpack.c.bf16 %v35_v30, %v34_v29  ;;  %v36_v32 = vld [vmem:[%s482_s1 + $0x70] sm:$0xff]  ;;  %v37_v33 = vld [vmem:[%s482_s1 + $0x78] sm:$0xff]  ;;  %v21_v35 = vld [vmem:[%s481_s0] sm:$0x1] }
   0xe   :  { %319 = vmatpush3.bf16.msra.mxu1 %v318_v18  ;;  %v312_v34 = vpack.c.bf16 %v37_v33, %v36_v32  ;;  %v116_v36 = vld [vmem:[%s484_s3 + $0x30] sm:$0xff]  ;;  %v117_v37 = vld [vmem:[%s484_s3 + $0x38] sm:$0xff]  ;;  %v38_v39 = vld [vmem:[%s483_s2] sm:$0x1]  ;;  %s330_s3 = scalar_lea.vmem %s202_s21, 16  ;;  %s334_s2 = scalar_lea.vmem %s202_s21, 32 }
   0xf   :  { %320 = vmatprep.subr.bf16.mxu1 %v354_v3  ;;  %v324_v38 = vpack.c.bf16 %v117_v37, %v116_v36  ;;  %v118_v44 = vld [vmem:[%s485_s4] sm:$0x1]  ;;  %p331_p0 = scmp.ne.s32.totalorder %s202_s21, %s330_s3  ;;  %p336_p2 = scmp.lt.s32.totalorder %s334_s2, %s330_s3 }
  0x10   :  { %301 = vmatpush3.bf16.msra.mxu0 %v300_v21 }
  0x11   :  { %302 = vmatprep.subr.bf16.mxu0 %v354_v3  ;;  %p337_p3 = por %p336_p2, %p335_p1 }
  0x12   :  { %322 = vmatpush3.bf16.msra.mxu1 %v321_v24 }
  0x13   :  { %323 = vmatprep.subr.bf16.mxu1 %v354_v3  ;;  %p338_p4 = pnand %p337_p3, %p331_p0 }
  0x14   :  { %304 = vmatpush3.bf16.msra.mxu0 %v303_v25 }
  0x15   :  { %305 = vmatprep.subr.bf16.mxu0 %v354_v3 }
  0x16   :  { %325 = vmatpush3.bf16.msra.mxu1 %v324_v38 }
  0x18   :  { %307 = vmatpush3.bf16.msra.mxu0 %v306_v28 }
  0x19   :  { %308 = vmatprep.subr.bf16.mxu0 %v354_v3 }
  0x1c   :  { %310 = vmatpush3.bf16.msra.mxu0 %v309_v31 }
  0x1d   :  { %311 = vmatprep.subr.bf16.mxu0 %v354_v3 }
  0x20   :  { %313 = vmatpush3.bf16.msra.mxu0 %v312_v34 }
  0x23   :  { %269 = vmatmul.mubr.f32.vlgmr.msra.gmra.mrb[0].mxu0 %v21_v35 }
  0xf6   :  { %v105_v40 = vpop.f32.mrb[0].mxu0 }
  0xf7   :  { %v106_v41 = vadd.f32 %v105_v40, %v38_v39  ;;  %v270_v42 = vpop.f32.mrb[1].mxu0 }
  0xf9   :  { %v109_v43 = vmax.f32 %v106_v41, 0.0 }
  0xfb   :  { %288 = vmatmul.mubr.msk.f32.vlgmr.msra.gmra.mrb[0].mxu1 %vm119_vm1, %v109_v43 }
 0x1ce   :  { %v189_v45 = vpop.f32.mrb[0].mxu1 }
 0x1cf   :  { %v190_v46 = vadd.f32 %v189_v45, %v118_v44  ;;  %v289_v47 = vpop.f32.mrb[1].mxu1 }
 0x1d1   :  { %194 = vst.msk [vmem:[#allocation2] sm:$0x1] %vm193_vm2, %v190_v46 }
 0x1d2   :  { %341 = shalt.err (!%p338_p4)
}
 0x1d3   :  { %s342_s4 = scalar_lea.hbm %s486_s5, 16 }
 0x1d4   :  { %p343_p5 = scmp.ne.s32.totalorder %s486_s5, %s342_s4  ;;  %p346_p6 = scmp.lt.u32.totalorder %s342_s4, %s486_s5 }
 0x1d6   :  { %p348_p7 = pnand %p346_p6, %p343_p5 }
 0x1d8   :  { %351 = shalt.err (!%p348_p7)
}
 0x1d9   :  { %204 = dma.vmem_to_hbm [thread:$0]  %s202_s21, 16, %s486_s5, [#allocation3]  }
 0x1da   :  { %352 = dma.done.wait [#allocation3], 16  }
 0x1db   :  { %353 = vsyncadd [#allocation3], 4294967280 }
 0x1dc   :  { %208 = vsyncpa [#allocation3], 1 }

</bundles_post_ra>
